<compile_context>
chip_gen: v5e
topology: v5e:2x2
jax: 0.10.0
libtpu: 0.0.40
codegen_flags: <defaults>
</compile_context>

<pallas_src>
import functools
import math

import jax
import jax.numpy as jnp
from jax.experimental import pallas as pl
from jax.experimental.pallas import tpu as pltpu  # noqa: F401  (TPU backend)


# ---------------------------------------------------------------------------
# Fused kernel
# ---------------------------------------------------------------------------
def _fused_encoder_kernel(*refs, num_layers, hidden_size, input_size):
    """leaky_relu(x@W1+b1) followed by `num_layers` fused LSTM cells.

    Ref layout (all f32, all full-extent / natural shapes):
      inputs : x(B,In), w1(In,E), b1(1,E), h_in(L,B,H), c_in(L,B,H),
               then per layer: wx(in_dim,4H), wh(H,4H), b(1,4H)
      outputs: h_out(L,B,H), c_out(L,B,H)
    Gate column order inside the 4H axis is [i | f | o | g] (module order).
    """
    n_in = 5 + 3 * num_layers
    in_refs, out_refs = refs[:n_in], refs[n_in:]
    x_ref, w1_ref, b1_ref, h_in_ref, c_in_ref = in_refs[:5]
    h_out_ref, c_out_ref = out_refs
    H = hidden_size

    # ---- enclinear1 + leaky_relu -----------------------------------------
    # K = input_size (=2) is tiny: do the contraction on the VPU as
    # `input_size` broadcast multiply-adds instead of an MXU push.
    x = x_ref[...]                       # (B, In)
    w1 = w1_ref[...]                     # (In, E)  (pre-transposed)
    emb = jnp.zeros((x.shape[0], w1.shape[1]), jnp.float32)
    for k in range(input_size):
        emb = emb + x[:, k:k + 1] * w1[k:k + 1, :]
    emb = emb + b1_ref[...]
    emb = jnp.where(emb >= 0, emb, 0.01 * emb)     # leaky_relu, slope 0.01

    # ---- stacked LSTM cells ------------------------------------------------
    layer_in = emb                        # (B, E) then (B, H)
    for l in range(num_layers):
        wx_ref, wh_ref, b_ref = in_refs[5 + 3 * l: 5 + 3 * (l + 1)]
        h = h_in_ref[l]                   # (B, H)
        c = c_in_ref[l]                   # (B, H)

        # two small MXU pushes; bias (bi+bh) pre-folded in the wrapper
        preact = (jnp.dot(layer_in, wx_ref[...],
                          preferred_element_type=jnp.float32)
                  + jnp.dot(h, wh_ref[...],
                            preferred_element_type=jnp.float32)
                  + b_ref[...])           # (B, 4H)

        # gate order of the module: [i | f | o | g]
        i_t = jax.nn.sigmoid(preact[:, 0 * H:1 * H])
        f_t = jax.nn.sigmoid(preact[:, 1 * H:2 * H])
        o_t = jax.nn.sigmoid(preact[:, 2 * H:3 * H])
        g_t = jnp.tanh(preact[:, 3 * H:4 * H])

        c_t = c * f_t + i_t * g_t
        h_t = o_t * jnp.tanh(c_t)

        h_out_ref[l] = h_t
        c_out_ref[l] = c_t
        layer_in = h_t


def _full_spec(shape):
    # single grid point -> whole array as one VMEM block
    return pl.BlockSpec(tuple(shape), lambda: tuple(0 for _ in shape))


# ---------------------------------------------------------------------------
# Wrapper-side layout plumbing (done ONCE per parameter set)
# ---------------------------------------------------------------------------
def pack_params(params, num_layers):
    """Pre-transpose weights and fold the two LSTM biases (no per-call ops)."""
    packed = {
        'w1': jnp.asarray(params['enclinear1']['weights'], jnp.float32).T,   # (In, E)
        'b1': jnp.asarray(params['enclinear1']['bias'], jnp.float32).reshape(1, -1),
        'layers': [],
    }
    for i in range(1, num_layers + 1):
        p = params['lstm{}'.format(i)]
        packed['layers'].append({
            'wx': jnp.asarray(p['i2h_w'], jnp.float32).T,                    # (in_dim, 4H)
            'wh': jnp.asarray(p['h2h_w'], jnp.float32).T,                    # (H, 4H)
            'b': jnp.asarray(p['i2h_b'] + p['h2h_b'], jnp.float32).reshape(1, -1),
        })
    return packed


def meta_encoder_rnn_forward(packed, x, hidden_in, hidden_size=16, num_layers=1):
    """Pallas implementation of MetaEncoderRNN.forward (single fused call).

    Returns (hidden_out: dict[str, (h, c)], output: (B, hidden_size)).
    """
    B, input_size = x.shape
    H = hidden_size
    L = num_layers

    h_in = jnp.stack([hidden_in['lstm{}'.format(i)][0]
                      for i in range(1, L + 1)]).astype(jnp.float32)   # (L,B,H)
    c_in = jnp.stack([hidden_in['lstm{}'.format(i)][1]
                      for i in range(1, L + 1)]).astype(jnp.float32)   # (L,B,H)

    inputs = [x.astype(jnp.float32), packed['w1'], packed['b1'], h_in, c_in]
    in_specs = [_full_spec((B, input_size)),
                _full_spec(packed['w1'].shape),
                _full_spec(packed['b1'].shape),
                _full_spec((L, B, H)),
                _full_spec((L, B, H))]
    for layer in packed['layers']:
        inputs += [layer['wx'], layer['wh'], layer['b']]
        in_specs += [_full_spec(layer['wx'].shape),
                     _full_spec(layer['wh'].shape),
                     _full_spec(layer['b'].shape)]

    out_shape = (jax.ShapeDtypeStruct((L, B, H), jnp.float32),
                 jax.ShapeDtypeStruct((L, B, H), jnp.float32))
    out_specs = (_full_spec((L, B, H)), _full_spec((L, B, H)))

    kernel = functools.partial(_fused_encoder_kernel, num_layers=L,
                               hidden_size=H, input_size=input_size)
    h_out, c_out = pl.pallas_call(
        kernel,
        out_shape=out_shape,
        in_specs=in_specs,
        out_specs=out_specs,
    )(*inputs)

    hidden_out = {'lstm{}'.format(i): (h_out[i - 1], c_out[i - 1])
                  for i in range(1, L + 1)}
    output = hidden_out['lstm{}'.format(L)][0]
    return hidden_out, output


# ---------------------------------------------------------------------------
# Parameter construction (deterministic, mirrors the module __init__ shapes)
# ---------------------------------------------------------------------------
def init_params(key, input_size=2, embedding_size=8, hidden_size=16, num_layers=1):
    params = {}
    key, k1 = jax.random.split(key)
    # MetaLinearLayer: xavier_uniform weights (E, In), zero bias
    bound = math.sqrt(6.0 / (input_size + embedding_size))
    params['enclinear1'] = {
        'weights': jax.random.uniform(k1, (embedding_size, input_size),
                                      jnp.float32, -bound, bound),
        'bias': jnp.zeros((1, embedding_size), jnp.float32),
    }
    std = 1.0 / math.sqrt(hidden_size)
    in_dim = embedding_size
    for i in range(1, num_layers + 1):
        key, ka, kb, kc, kd = jax.random.split(key, 5)
        params['lstm{}'.format(i)] = {
            'i2h_w': jax.random.uniform(ka, (4 * hidden_size, in_dim),
                                        jnp.float32, -std, std),
            'i2h_b': jax.random.uniform(kb, (1, 4 * hidden_size),
                                        jnp.float32, -std, std),
            'h2h_w': jax.random.uniform(kc, (4 * hidden_size, hidden_size),
                                        jnp.float32, -std, std),
            'h2h_b': jax.random.uniform(kd, (1, 4 * hidden_size),
                                        jnp.float32, -std, std),
        }
        in_dim = hidden_size
    return params


# ---------------------------------------------------------------------------
# Pure-JAX reference (correctness check)
# ---------------------------------------------------------------------------
def _reference_forward(params, x, hidden_in, hidden_size=16, num_layers=1):
    lin = params['enclinear1']
    y = x @ lin['weights'].T + lin['bias']
    embedded = jnp.where(y >= 0, y, 0.01 * y)
    layer_in = embedded
    hidden_out = {}
    H = hidden_size
    for i in range(1, num_layers + 1):
        p = params['lstm{}'.format(i)]
        h, c = hidden_in['lstm{}'.format(i)]
        preact = layer_in @ p['i2h_w'].T + p['i2h_b'] + h @ p['h2h_w'].T + p['h2h_b']
        gates = jax.nn.sigmoid(preact[:, :3 * H])
        g = jnp.tanh(preact[:, 3 * H:])
        i_t, f_t, o_t = gates[:, :H], gates[:, H:2 * H], gates[:, 2 * H:3 * H]
        c_t = c * f_t + i_t * g
        h_t = o_t * jnp.tanh(c_t)
        hidden_out['lstm{}'.format(i)] = (h_t, c_t)
        layer_in = h_t
    return hidden_out, hidden_out['lstm{}'.format(num_layers)][0]


# ---------------------------------------------------------------------------
def _run_check(num_layers, batch=8, input_size=2, embedding_size=8,
               hidden_size=16, seed=0):
    key = jax.random.PRNGKey(seed)
    key, kx = jax.random.split(key)
    params = init_params(key, input_size, embedding_size, hidden_size, num_layers)
    packed = pack_params(params, num_layers)

    x = jax.random.normal(kx, (batch, input_size), jnp.float32)
    hidden_in = {}
    for i in range(1, num_layers + 1):
        key, kh, kc = jax.random.split(key, 3)
        hidden_in['lstm{}'.format(i)] = (
            jax.random.normal(kh, (batch, hidden_size), jnp.float32),
            jax.random.normal(kc, (batch, hidden_size), jnp.float32))

    hidden_out, output = meta_encoder_rnn_forward(
        packed, x, hidden_in, hidden_size, num_layers)
    output = jax.block_until_ready(output)

    ref_hidden, ref_out = _reference_forward(
        params, x, hidden_in, hidden_size, num_layers)
    assert output.shape == (batch, hidden_size)
    assert jnp.allclose(output, ref_out, atol=1e-5, rtol=1e-5)
    for i in range(1, num_layers + 1):
        k = 'lstm{}'.format(i)
        assert jnp.allclose(hidden_out[k][0], ref_hidden[k][0], atol=1e-5, rtol=1e-5)
        assert jnp.allclose(hidden_out[k][1], ref_hidden[k][1], atol=1e-5, rtol=1e-5)


if __name__ == "__main__":
    _run_check(num_layers=1)   # module default configuration
    _run_check(num_layers=2)   # stacked-layer path
    print("KERNEL_OK")
</pallas_src>

<mosaic_0001>
module attributes {stable_mosaic.version = 11 : i64} {
  func.func @_fused_encoder_kernel(%arg0: memref<8x2xf32, #tpu.memory_space<vmem>>, %arg1: memref<2x8xf32, #tpu.memory_space<vmem>>, %arg2: memref<1x8xf32, #tpu.memory_space<vmem>>, %arg3: memref<1x8x16xf32, #tpu.memory_space<vmem>>, %arg4: memref<1x8x16xf32, #tpu.memory_space<vmem>>, %arg5: memref<8x64xf32, #tpu.memory_space<vmem>>, %arg6: memref<16x64xf32, #tpu.memory_space<vmem>>, %arg7: memref<1x64xf32, #tpu.memory_space<vmem>>, %arg8: memref<1x8x16xf32, #tpu.memory_space<vmem>>, %arg9: memref<1x8x16xf32, #tpu.memory_space<vmem>>) attributes {dimension_semantics = [], scalar_prefetch = 0 : i64, scratch_operands = 0 : i64, tpu.core_type = #tpu.core_type<tc>} {
    %c0 = arith.constant 0 : index
    %c0_0 = arith.constant 0 : index
    %0 = vector.load %arg0[%c0, %c0_0] : memref<8x2xf32, #tpu.memory_space<vmem>>, vector<8x2xf32>
    %c0_1 = arith.constant 0 : index
    %c0_2 = arith.constant 0 : index
    %1 = vector.load %arg1[%c0_1, %c0_2] : memref<2x8xf32, #tpu.memory_space<vmem>>, vector<2x8xf32>
    %cst = arith.constant 0.000000e+00 : f32
    %2 = vector.broadcast %cst : f32 to vector<8x8xf32>
    %3 = vector.extract_strided_slice %0 {offsets = [0, 0], sizes = [8, 1], strides = [1, 1]} : vector<8x2xf32> to vector<8x1xf32>
    %4 = vector.extract_strided_slice %1 {offsets = [0, 0], sizes = [1, 8], strides = [1, 1]} : vector<2x8xf32> to vector<1x8xf32>
    %5 = vector.broadcast %3 : vector<8x1xf32> to vector<8x8xf32>
    %6 = vector.broadcast %4 : vector<1x8xf32> to vector<8x8xf32>
    %7 = arith.mulf %5, %6 : vector<8x8xf32>
    %8 = arith.addf %2, %7 : vector<8x8xf32>
    %9 = vector.extract_strided_slice %0 {offsets = [0, 1], sizes = [8, 1], strides = [1, 1]} : vector<8x2xf32> to vector<8x1xf32>
    %10 = vector.extract_strided_slice %1 {offsets = [1, 0], sizes = [1, 8], strides = [1, 1]} : vector<2x8xf32> to vector<1x8xf32>
    %11 = vector.broadcast %9 : vector<8x1xf32> to vector<8x8xf32>
    %12 = vector.broadcast %10 : vector<1x8xf32> to vector<8x8xf32>
    %13 = arith.mulf %11, %12 : vector<8x8xf32>
    %14 = arith.addf %8, %13 : vector<8x8xf32>
    %c0_3 = arith.constant 0 : index
    %c0_4 = arith.constant 0 : index
    %15 = vector.load %arg2[%c0_3, %c0_4] : memref<1x8xf32, #tpu.memory_space<vmem>>, vector<1x8xf32>
    %16 = vector.broadcast %15 : vector<1x8xf32> to vector<8x8xf32>
    %17 = arith.addf %14, %16 : vector<8x8xf32>
    %cst_5 = arith.constant 0.000000e+00 : f32
    %18 = vector.broadcast %cst_5 : f32 to vector<8x8xf32>
    %19 = arith.cmpf oge, %17, %18 : vector<8x8xf32>
    %cst_6 = arith.constant 0.00999999977 : f32
    %20 = vector.broadcast %cst_6 : f32 to vector<8x8xf32>
    %21 = arith.mulf %20, %17 : vector<8x8xf32>
    %22 = arith.select %19, %17, %21 : vector<8x8xi1>, vector<8x8xf32>
    %c0_7 = arith.constant 0 : index
    %c0_8 = arith.constant 0 : index
    %c0_9 = arith.constant 0 : index
    %23 = vector.load %arg3[%c0_7, %c0_8, %c0_9] : memref<1x8x16xf32, #tpu.memory_space<vmem>>, vector<1x8x16xf32>
    %24 = vector.shape_cast %23 : vector<1x8x16xf32> to vector<8x16xf32>
    %c0_10 = arith.constant 0 : index
    %c0_11 = arith.constant 0 : index
    %c0_12 = arith.constant 0 : index
    %25 = vector.load %arg4[%c0_10, %c0_11, %c0_12] : memref<1x8x16xf32, #tpu.memory_space<vmem>>, vector<1x8x16xf32>
    %26 = vector.shape_cast %25 : vector<1x8x16xf32> to vector<8x16xf32>
    %c0_13 = arith.constant 0 : index
    %c0_14 = arith.constant 0 : index
    %27 = vector.load %arg5[%c0_13, %c0_14] : memref<8x64xf32, #tpu.memory_space<vmem>>, vector<8x64xf32>
    %cst_15 = arith.constant dense<0.000000e+00> : vector<8x64xf32>
    %28 = tpu.matmul %22, %27, %cst_15 {dimension_numbers = #tpu.dot_dimension_numbers<[1], [0], [0], [1], [0, 0, 1, 1], [], []>} : vector<8x8xf32>, vector<8x64xf32>, vector<8x64xf32> -> vector<8x64xf32>
    %c0_16 = arith.constant 0 : index
    %c0_17 = arith.constant 0 : index
    %29 = vector.load %arg6[%c0_16, %c0_17] : memref<16x64xf32, #tpu.memory_space<vmem>>, vector<16x64xf32>
    %cst_18 = arith.constant dense<0.000000e+00> : vector<8x64xf32>
    %30 = tpu.matmul %24, %29, %cst_18 {dimension_numbers = #tpu.dot_dimension_numbers<[1], [0], [0], [1], [0, 0, 1, 1], [], []>} : vector<8x16xf32>, vector<16x64xf32>, vector<8x64xf32> -> vector<8x64xf32>
    %31 = arith.addf %28, %30 : vector<8x64xf32>
    %c0_19 = arith.constant 0 : index
    %c0_20 = arith.constant 0 : index
    %32 = vector.load %arg7[%c0_19, %c0_20] : memref<1x64xf32, #tpu.memory_space<vmem>>, vector<1x64xf32>
    %33 = vector.broadcast %32 : vector<1x64xf32> to vector<8x64xf32>
    %34 = arith.addf %31, %33 : vector<8x64xf32>
    %35 = vector.extract_strided_slice %34 {offsets = [0, 0], sizes = [8, 16], strides = [1, 1]} : vector<8x64xf32> to vector<8x16xf32>
    %36 = arith.negf %35 : vector<8x16xf32>
    %37 = math.exp %36 : vector<8x16xf32>
    %cst_21 = arith.constant 1.000000e+00 : f32
    %38 = vector.broadcast %cst_21 : f32 to vector<8x16xf32>
    %39 = arith.addf %38, %37 : vector<8x16xf32>
    %40 = arith.divf %38, %39 : vector<8x16xf32>
    %41 = vector.extract_strided_slice %34 {offsets = [0, 16], sizes = [8, 16], strides = [1, 1]} : vector<8x64xf32> to vector<8x16xf32>
    %42 = arith.negf %41 : vector<8x16xf32>
    %43 = math.exp %42 : vector<8x16xf32>
    %cst_22 = arith.constant 1.000000e+00 : f32
    %44 = vector.broadcast %cst_22 : f32 to vector<8x16xf32>
    %45 = arith.addf %44, %43 : vector<8x16xf32>
    %46 = arith.divf %44, %45 : vector<8x16xf32>
    %47 = vector.extract_strided_slice %34 {offsets = [0, 32], sizes = [8, 16], strides = [1, 1]} : vector<8x64xf32> to vector<8x16xf32>
    %48 = arith.negf %47 : vector<8x16xf32>
    %49 = math.exp %48 : vector<8x16xf32>
    %cst_23 = arith.constant 1.000000e+00 : f32
    %50 = vector.broadcast %cst_23 : f32 to vector<8x16xf32>
    %51 = arith.addf %50, %49 : vector<8x16xf32>
    %52 = arith.divf %50, %51 : vector<8x16xf32>
    %53 = vector.extract_strided_slice %34 {offsets = [0, 48], sizes = [8, 16], strides = [1, 1]} : vector<8x64xf32> to vector<8x16xf32>
    %54 = math.tanh %53 : vector<8x16xf32>
    %55 = arith.mulf %26, %46 : vector<8x16xf32>
    %56 = arith.mulf %40, %54 : vector<8x16xf32>
    %57 = arith.addf %55, %56 : vector<8x16xf32>
    %58 = math.tanh %57 : vector<8x16xf32>
    %59 = arith.mulf %52, %58 : vector<8x16xf32>
    %c0_24 = arith.constant 0 : index
    %c0_25 = arith.constant 0 : index
    %c0_26 = arith.constant 0 : index
    %60 = vector.load %arg8[%c0_24, %c0_25, %c0_26] : memref<1x8x16xf32, #tpu.memory_space<vmem>>, vector<1x8x16xf32>
    %61 = vector.shape_cast %60 : vector<1x8x16xf32> to vector<8x16xf32>
    %62 = vector.shape_cast %59 : vector<8x16xf32> to vector<1x8x16xf32>
    tpu.vector_store %arg8[%c0_24, %c0_25, %c0_26], %62 {strides = array<i32>} : memref<1x8x16xf32, #tpu.memory_space<vmem>>, vector<1x8x16xf32>,
    %c0_27 = arith.constant 0 : index
    %c0_28 = arith.constant 0 : index
    %c0_29 = arith.constant 0 : index
    %63 = vector.load %arg9[%c0_27, %c0_28, %c0_29] : memref<1x8x16xf32, #tpu.memory_space<vmem>>, vector<1x8x16xf32>
    %64 = vector.shape_cast %63 : vector<1x8x16xf32> to vector<8x16xf32>
    %65 = vector.shape_cast %57 : vector<8x16xf32> to vector<1x8x16xf32>
    tpu.vector_store %arg9[%c0_27, %c0_28, %c0_29], %65 {strides = array<i32>} : memref<1x8x16xf32, #tpu.memory_space<vmem>>, vector<1x8x16xf32>,
    return
  }
}

</mosaic_0001>

<bundles_post_ra>
// kernel: tpu_custom_call.1
= control target key start
LH: loop header
LB: loop body
LE: loop exit
PB: predicated region body
PF: predicated region fallthrough
CT: control target
= control target key end

     0   :  { %15 = vsyncpa [#allocation3], 0  ;;  %s488_s0 = inlined_call_operand.vmem [shape: f32[8,2], index: 0, kind: input, shape index: {}]   ;;  %s489_s1 = inlined_call_operand.vmem [shape: f32[2,8], index: 1, kind: input, shape index: {}]   ;;  %s490_s2 = inlined_call_operand.vmem [shape: f32[1,8], index: 2, kind: input, shape index: {}]   ;;  %s491_s3 = inlined_call_operand.vmem [shape: f32[1,8,16], index: 3, kind: input, shape index: {}]   ;;  %s492_s4 = inlined_call_operand.hbm [shape: f32[1,8,16], index: 4, kind: input, shape index: {}]   ;;  %s493_s5 = inlined_call_operand.hbm [shape: f32[8,64], index: 5, kind: input, shape index: {}]   ;;  %s494_s6 = inlined_call_operand.hbm [shape: f32[16,64], index: 6, kind: input, shape index: {}]   ;;  %s495_s7 = inlined_call_operand.vmem [shape: f32[1,64], index: 7, kind: input, shape index: {}]   ;;  %s496_s8 = inlined_call_operand.hbm [shape: f32[1,8,16], index: 8, kind: output, shape index: {0}]   ;;  %s497_s9 = inlined_call_operand.hbm [shape: f32[1,8,16], index: 9, kind: output, shape index: {1}]  }
   0x1   :  { %16 = vsyncpa [#allocation6], 0 }
   0x2   :  { %17 = vsyncpa [#allocation4], 0  ;;  %s43_s11 = sshll.u32 %s493_s5, 4  ;;  %s44_s11 = int_to_ptr.hbm [resolvable:$true] %s43_s11 }
   0x3   :  { %18 = vsyncpa [#allocation10], 0  ;;  %s392_s12 = smov [#allocation5]   ;;  %s32_s16 = sshll.u32 %s492_s4, 4  ;;  %s33_s16 = int_to_ptr.hbm [resolvable:$true] %s32_s16 }
   0x4   :  { %s45_s13 = sshll.u32 %s392_s12, 4  ;;  %s393_s17 = smov [#allocation2]   ;;  %s46_s13 = int_to_ptr.vmem [resolvable:$true] %s45_s13 }
   0x5   :  { %48 = dma.hbm_to_vmem [thread:$0]  %s44_s11, 128, %s46_s13, [#allocation6]  }
   0x6   :  { %s34_s18 = sshll.u32 %s393_s17, 4  ;;  %s53_s21 = sshll.u32 %s494_s6, 4  ;;  %s35_s18 = int_to_ptr.vmem [resolvable:$true] %s34_s18  ;;  %s54_s21 = int_to_ptr.hbm [resolvable:$true] %s53_s21 }
   0x7   :  { %37 = dma.hbm_to_vmem [thread:$0]  %s33_s16, 128, %s35_s18, [#allocation3]  }
   0x8   :  { %s394_s5 = smov [#allocation7]   ;;  %s395_s23 = smov 128  }
   0x9   :  { %s55_s22 = sshll.u32 %s394_s5, 4  ;;  %s396_s24 = smov 8   ;;  %s56_s22 = int_to_ptr.vmem [resolvable:$true] %s55_s22 }
   0xa   :  { %61 = dma.hbm_to_vmem [thread:$0]  %s54_s21, 256, %s56_s22, [#allocation6], %s395_s23, %s395_s23, %s396_s24  }
   0xb   :  { %384 = dma.done.wait [#allocation3], 128  }
   0xc   :  { %385 = vsyncadd [#allocation3], 4294967168 }
   0xd   :  { %386 = dma.done.wait [#allocation6], 384  }
   0xe   :  { %387 = vsyncadd [#allocation6], 4294966912  ;;  %v397_v0 = vmov 0   ;;  %v76_v1 = vld [vmem:[%s488_s0] sm:$0xff]  ;;  %v398_v2 = vmov 1   ;;  %v105_v3 = vld [vmem:[#allocation7 + $0x8] sm:$0xff] }
   0xf   :  { %252 = vset.pattern.permute.xlu0 %v397_v0  ;;  %v104_v4 = vld [vmem:[#allocation7] sm:$0xff]  ;;  %v103_v5 = vld [vmem:[#allocation5] sm:$0xff]  ;;  %124 = vmatpush.msra.mxu0 %v105_v3  ;;  %v101_v6 = vld [vmem:[%s491_s3] sm:$0xff]  ;;  %vm106_vm0 = vcmask 130048   ;;  %vm130_vm2 = vcmask 64512   ;;  %s402_s10 = smov [#allocation9]  }
  0x10   :  { %80 = vperm.xlu0 %252, %v76_v1   ;;  %149 = vmatpush.msra.mxu1 %v103_v5  ;;  %v77_v8 = vld [vmem:[%s489_s1] sm:$0x3]  ;;  %s399_s1 = smov 112   ;;  %s218_s11 = sshll.u32 %s402_s10, 4  ;;  %s219_s11 = int_to_ptr.vmem [resolvable:$true] %s218_s11 }
  0x11   :  { %125 = vmatpush.msra.mxu0 %v104_v4  ;;  %v83_v9 = vperm.slane %v77_v8, 0  ;;  %v90_v10 = vperm.slane %v77_v8, 1  ;;  %v254_v13 = vld [vmem:[%s490_s2] ss:$0 sm:$0xff]  ;;  %s400_s2 = smov 80   ;;  %s220_s14 = sshll.u32 %s497_s9, 4  ;;  %s221_s14 = int_to_ptr.hbm [resolvable:$true] %s220_s14 }
  0x12   :  { %236 = vmatmul.msk.f32.vlgmr.msra.gmra.mxu0 %vm106_vm0, %v101_v6  ;;  %v255_v20 = vld [vmem:[%s495_s7] ss:$0 sm:$0xff]  ;;  %s401_s7 = smov 32   ;;  %s403_s15 = smov 96  }
  0x13   :  { %v102_v39 = vld [vmem:[#allocation2] sm:$0xff]  ;;  %s404_s16 = smov [#allocation8]   ;;  %s209_s20 = sshll.u32 %s496_s8, 4  ;;  %s210_s20 = int_to_ptr.hbm [resolvable:$true] %s209_s20 }
  0x14   :  { %s207_s17 = sshll.u32 %s404_s16, 4  ;;  %s208_s17 = int_to_ptr.vmem [resolvable:$true] %s207_s17 }
  0x18   :  { %253 = vset.pattern.permute.xlu0 %v398_v2 }
  0x19   :  { %87 = vperm.xlu0 %253, %v76_v1  }
  0x82   :  { %v81_v7 = vpop.permute.xlu0 %80 }
  0x83   :  { %v84_v12 = vmul.f32 %v83_v9, %v81_v7 }
  0x8b   :  { %v88_v11 = vpop.permute.xlu0 %87 }
  0x8c   :  { %v91_v14 = vmul.f32 %v90_v10, %v88_v11 }
  0x8e   :  { %v92_v15 = vadd.f32 %v91_v14, %v84_v12 }
  0x8f   :  { %v127_v19 = vpop.f32.mrf.mxu0 }
  0x90   :  { %v97_v16 = vadd.f32 %v254_v13, %v92_v15 }
  0x92   :  { %vm98_vm1 = vcmp.ge.f32.partialorder %v97_v16, 0.0  ;;  %v99_v17 = vmul.f32 0.01, %v97_v16 }
  0x94   :  { %v100_v18 = vsel %vm98_vm1, %v97_v16, %v99_v17 }
  0x95   :  { %237 = vmatmul.msk.f32.vlgmr.msra.gmra.mxu1 %vm130_vm2, %v100_v18 }
 0x112   :  { %v151_v21 = vpop.f32.mrf.mxu1 }
 0x113   :  { %v152_v22 = vadd.f32 %v151_v21, %v127_v19 }
 0x115   :  { %v158_v23 = vadd.f32 %v255_v20, %v152_v22 }
 0x117   :  { %v238_v24 = vmul.f32 -1.442695, %v158_v23 }
 0x119   :  { %256 = vpow2.f32 %v238_v24 }
 0x11f   :  { %v257_v25 = vpop.eup %256 }
 0x120   :  { %v162_v26 = vadd.f32 1.0, %v257_v25 }
 0x122   :  { %258 = vrcp.f32 %v162_v26  ;;  %v174_v30 = vand.u32 2147483648, %v162_v26  ;;  %v172_v32 = vand.u32 2147483647, %v162_v26  ;;  %vm168_vm4 = vweird.f32 %v162_v26 }
 0x123   :  { %260 = vtanh.f32 %v158_v23 }
 0x124   :  { %v175_v34 = vor.u32 1.1754944e-38, %v174_v30  ;;  %vm173_vm6 = vcmp.eq.f32.partialorder %v172_v32, 8.507059e+37 }
 0x128   :  { %v259_v27 = vpop.eup %258 }
 0x129   :  { %v164_v28 = vmul.f32 %v259_v27, %v162_v26  ;;  %vm169_vm3 = vweird.f32 %v259_v27  ;;  %v261_v37 = vpop.eup %260 }
 0x12a   :  { %vm170_vm5 = vmor %vm168_vm4, %vm169_vm3 }
 0x12b   :  { %v165_v29 = vsub.f32 1.0, %v164_v28 }
 0x12d   :  { %v166_v31 = vmul.f32 %v259_v27, %v165_v29 }
 0x12f   :  { %v167_v33 = vadd.f32 %v259_v27, %v166_v31 }
 0x131   :  { %v171_v35 = vsel %vm170_vm5, %v259_v27, %v167_v33 }
 0x132   :  { %v176_v36 = vsel %vm173_vm6, %v175_v34, %v171_v35 }
 0x133   :  { %180 = vrot.lane.b32.xlu1 %v176_v36, %s399_s1 }
 0x13b   :  { %185 = vrot.lane.b32.xlu1 %v261_v37, %s400_s2 }
 0x1a5   :  { %v181_v38 = vpop.permute.xlu1 %180 }
 0x1a6   :  { %v183_v41 = vmul.f32 %v181_v38, %v102_v39 }
 0x1ad   :  { %v186_v40 = vpop.permute.xlu1 %185 }
 0x1ae   :  { %v188_v42 = vmul.f32 %v186_v40, %v176_v36 }
 0x1b0   :  { %v189_v43 = vadd.f32 %v188_v42, %v183_v41 }
 0x1b2   :  { %262 = vtanh.f32 %v189_v43  ;;  %201 = vst.msk [vmem:[#allocation9] sm:$0xff] %vm106_vm0, %v189_v43 }
 0x1b3   :  { %223 = dma.vmem_to_hbm [thread:$0]  %s219_s11, 128, %s221_s14, [#allocation10]  }
 0x1b8   :  { %v263_v44 = vpop.eup %262 }
 0x1b9   :  { %192 = vrot.lane.b32.xlu2 %v263_v44, %s401_s7 }
 0x213   :  { %v193_v45 = vpop.permute.xlu2 %192 }
 0x214   :  { %v195_v46 = vmul.f32 %v193_v45, %v176_v36 }
 0x216   :  { %197 = vrot.lane.b32.xlu2 %v195_v46, %s403_s15 }
 0x270   :  { %v198_v47 = vpop.permute.xlu2 %197 }
 0x271   :  { %200 = vst.msk [vmem:[#allocation8] sm:$0xff] %vm106_vm0, %v198_v47 }
 0x272   :  { %212 = dma.vmem_to_hbm [thread:$0]  %s208_s17, 128, %s210_s20, [#allocation4]  }
 0x273   :  { %388 = dma.done.wait [#allocation4], 128  }
 0x274   :  { %389 = vsyncadd [#allocation4], 4294967168 }
 0x275   :  { %390 = dma.done.wait [#allocation10], 128  }
 0x276   :  { %391 = vsyncadd [#allocation10], 4294967168 }
 0x277   :  { %232 = vsyncpa [#allocation3], 1 }
 0x278   :  { %233 = vsyncpa [#allocation6], 1 }
 0x279   :  { %234 = vsyncpa [#allocation4], 1 }
 0x27a   :  { %235 = vsyncpa [#allocation10], 1 }

</bundles_post_ra>
